<compile_context>
chip_gen: v5e
topology: v5e:2x2
jax: 0.10.0
libtpu: 0.0.40
codegen_flags: <defaults>
</compile_context>

<pallas_src>
import functools

import jax
import jax.numpy as jnp
from jax.experimental import pallas as pl
from jax.experimental.pallas import tpu as pltpu


def _softplus(x):
    # Numerically stable softplus: max(x,0) + log1p(exp(-|x|))
    return jnp.maximum(x, 0.0) + jnp.log1p(jnp.exp(-jnp.abs(x)))


def _round_up(x, m):
    return ((x + m - 1) // m) * m


# ---------------------------------------------------------------------------
# Kernels
# ---------------------------------------------------------------------------

def _wgangp_d_grad_kernel(real_ref, gen_ref, g_ref, out_ref, acc_ref, *,
                          lam, penalty_target, batch):
    """Streaming reduction over the F axis of the flattened gradient.

    grid = (num_f_tiles,), axis 'arbitrary' (reduction).
      real_ref, gen_ref : [B, 1]        (resident across all steps)
      g_ref             : [B, F_TILE]   (current gradient tile)
      out_ref           : [1, 1] SMEM   (scalar loss, written at finalize)
      acc_ref           : [B, F_TILE] f32 VMEM scratch (elementwise sq-sum acc)
    """
    k = pl.program_id(0)

    @pl.when(k == 0)
    def _init():
        acc_ref[...] = jnp.zeros_like(acc_ref)

    # Steady state: pure VPU fma, overlapped with the next tile's DMA.
    g = g_ref[...].astype(jnp.float32)
    acc_ref[...] += g * g

    @pl.when(k == pl.num_programs(0) - 1)
    def _finalize():
        real = real_ref[...].astype(jnp.float32)
        gen = gen_ref[...].astype(jnp.float32)
        loss = jnp.mean(_softplus(-real)) + jnp.mean(_softplus(gen))
        # mean over batch of per-row squared L2 norms == total sum / B
        # (zero-padding along F contributes nothing to the sum of squares).
        total_sq = jnp.sum(acc_ref[...])
        penalty = total_sq * (lam / (penalty_target * penalty_target * batch))
        out_ref[0, 0] = loss + penalty


def _wgangp_d_eps_kernel(rg_ref, out_ref, *, eps):
    """Tiny single-block kernel; rg_ref is [2, B] with row0=real, row1=gen."""
    x = rg_ref[...].astype(jnp.float32)
    real = x[0:1, :]
    gen = x[1:2, :]
    loss = jnp.mean(_softplus(-real)) + jnp.mean(_softplus(gen))
    out_ref[0, 0] = loss + eps * jnp.mean(real * real)


# ---------------------------------------------------------------------------
# Wrapper
# ---------------------------------------------------------------------------

def wgangp_d_loss(real, gen, grad_real=None, *, lam=10.0, eps=0.001,
                  penalty_target=1.0, penalty_type="grad", f_tile=None):
    """Pallas implementation of WGANGP_D.forward.

    real, gen : [B, 1] discriminator scores.
    grad_real : [B, C, H, W] gradient of real.sum() w.r.t. img (required for
                penalty_type == 'grad'); computed via jax.grad by the caller.
                May be bf16 or f32; accumulation is always f32 in-kernel.
    Returns a scalar float32 loss.
    """
    real = jnp.asarray(real)
    gen = jnp.asarray(gen)
    B = real.shape[0]

    out_shape = jax.ShapeDtypeStruct((1, 1), jnp.float32)
    out_spec = pl.BlockSpec(memory_space=pltpu.MemorySpace.SMEM)

    if penalty_type == "grad":
        assert grad_real is not None
        # Same flattening as torch's grad_real.view(B, -1); keep native dtype
        # (HBM traffic is the bottleneck; kernel casts to f32 per tile).
        g_flat = jnp.asarray(grad_real).reshape(B, -1)
        F = g_flat.shape[1]
        itemsize = jnp.dtype(g_flat.dtype).itemsize

        if f_tile is None:
            # ~<=1 MiB per-step input tile: comfortably inside v5e's 16 MiB
            # scoped VMEM with double-buffering + the f32 accumulator, and
            # independent of image size on v7x's 64 MiB VMEM, while still big
            # enough to amortize the ~0.35 us/step grid overhead.
            max_lanes = max(128, (1 << 20) // max(1, B * itemsize))
            f_tile = min(8192, (max_lanes // 128) * 128, _round_up(F, 128))
        assert f_tile % 128 == 0, "F tile must be a multiple of 128 lanes"

        f_padded = _round_up(F, f_tile)
        if f_padded != F:
            # Zero padding is safe: contributes 0 to the sum of squares.
            g_flat = jnp.pad(g_flat, ((0, 0), (0, f_padded - F)))
        num_tiles = f_padded // f_tile

        kernel = functools.partial(
            _wgangp_d_grad_kernel,
            lam=float(lam),
            penalty_target=float(penalty_target),
            batch=float(B),
        )
        cost = pl.CostEstimate(
            flops=2 * B * f_padded + 16 * B,
            transcendentals=2 * B,
            bytes_accessed=B * f_padded * itemsize + 2 * B * real.dtype.itemsize + 4,
        )

        out = pl.pallas_call(
            kernel,
            out_shape=out_shape,
            grid=(num_tiles,),
            in_specs=[
                pl.BlockSpec((B, 1), lambda k: (0, 0)),        # real (resident)
                pl.BlockSpec((B, 1), lambda k: (0, 0)),        # gen  (resident)
                pl.BlockSpec((B, f_tile), lambda k: (0, k)),   # gradient tile
            ],
            out_specs=out_spec,
            scratch_shapes=[pltpu.VMEM((B, f_tile), jnp.float32)],
            compiler_params=pltpu.CompilerParams(
                dimension_semantics=("arbitrary",)),
            cost_estimate=cost,
        )(real, gen, g_flat)

    elif penalty_type == "eps":
        # Fuse real/gen into one small block; kernel is overhead-dominated
        # regardless, so keep it to a single pallas_call.
        rg = jnp.stack([real.reshape(B), gen.reshape(B)], axis=0)   # [2, B]
        kernel = functools.partial(_wgangp_d_eps_kernel, eps=float(eps))
        out = pl.pallas_call(
            kernel,
            out_shape=out_shape,
            grid=(1,),
            in_specs=[pl.BlockSpec((2, B), lambda i: (0, 0))],
            out_specs=out_spec,
        )(rg)
    else:
        raise ValueError(f"unknown penalty_type: {penalty_type}")

    return out[0, 0]


# ---------------------------------------------------------------------------
# Demo / self-check
# ---------------------------------------------------------------------------

if __name__ == "__main__":
    # Small deterministic setup consistent with the module's forward:
    #   img  : [B, C, H, W] = [2, 4, 16, 16]   (NCHW, as in PyTorch)
    #   real : D(img_real)  -> [B, 1]
    #   gen  : D(img_fake)  -> [B, 1]
    key = jax.random.PRNGKey(0)
    k_img, k_fake, k_w, k_b = jax.random.split(key, 4)

    B, C, H, W = 2, 4, 16, 16
    img_real = jax.random.normal(k_img, (B, C, H, W), jnp.float32)
    img_fake = jax.random.normal(k_fake, (B, C, H, W), jnp.float32)

    # Tiny synthetic "discriminator" (deterministic linear head) used only to
    # provide `real`, `gen`, and the autograd path grad(real.sum(), img).
    W_d = jax.random.normal(k_w, (C * H * W, 1), jnp.float32) * 0.02
    b_d = jax.random.normal(k_b, (1,), jnp.float32) * 0.02

    def discriminator(x):
        return x.reshape(x.shape[0], -1) @ W_d + b_d   # [B, 1]

    real = discriminator(img_real)
    gen = discriminator(img_fake)
    grad_real = jax.grad(lambda x: jnp.sum(discriminator(x)))(img_real)

    # Pure-JAX references.
    def ref_grad_loss(real, gen, grad_real, lam, pt):
        sp = jax.nn.softplus
        loss = jnp.mean(sp(-real)) + jnp.mean(sp(gen))
        sq = jnp.sum(grad_real.reshape(grad_real.shape[0], -1) ** 2, axis=1)
        return loss + jnp.mean(sq) * (lam / pt ** 2)

    def ref_eps_loss(real, gen, eps):
        sp = jax.nn.softplus
        return jnp.mean(sp(-real)) + jnp.mean(sp(gen)) + eps * jnp.mean(real ** 2)

    ref_g = ref_grad_loss(real, gen, grad_real, 10.0, 1.0)
    ref_e = ref_eps_loss(real, gen, 0.001)

    # 1) penalty_type='grad' with the auto-selected tile (single tile here).
    loss_grad = wgangp_d_loss(real, gen, grad_real, lam=10.0,
                              penalty_target=1.0, penalty_type="grad")
    loss_grad = jax.block_until_ready(loss_grad)
    assert jnp.allclose(loss_grad, ref_g, rtol=1e-5, atol=1e-5), (loss_grad, ref_g)

    # 2) Same, with an explicit small tile to exercise the multi-step
    #    accumulate / finalize path (grid = F / 256 = 4 steps).
    loss_grad_tiled = wgangp_d_loss(real, gen, grad_real, lam=10.0,
                                    penalty_target=1.0, penalty_type="grad",
                                    f_tile=256)
    loss_grad_tiled = jax.block_until_ready(loss_grad_tiled)
    assert jnp.allclose(loss_grad_tiled, ref_g, rtol=1e-5, atol=1e-5), (
        loss_grad_tiled, ref_g)

    # 3) penalty_type='eps' branch.
    loss_eps = wgangp_d_loss(real, gen, eps=0.001, penalty_type="eps")
    loss_eps = jax.block_until_ready(loss_eps)
    assert jnp.allclose(loss_eps, ref_e, rtol=1e-5, atol=1e-5), (loss_eps, ref_e)

    print("KERNEL_OK")
</pallas_src>

<mosaic_0001>
module attributes {stable_mosaic.version = 11 : i64} {
  func.func @_wgangp_d_grad_kernel(%arg0: i32, %arg1: memref<2x1xf32, #tpu.memory_space<vmem>>, %arg2: memref<2x1xf32, #tpu.memory_space<vmem>>, %arg3: memref<2x1024xf32, #tpu.memory_space<vmem>>, %arg4: memref<1x1xf32, #tpu.memory_space<smem>>, %arg5: memref<2x1024xf32, #tpu.memory_space<vmem>>) attributes {dimension_semantics = [#tpu.dimension_semantics<arbitrary>], iteration_bounds = array<i64: 1>, scalar_prefetch = 0 : i64, scratch_operands = 1 : i64, tpu.core_type = #tpu.core_type<tc>, window_params = [{pipeline_mode = #tpu.pipeline_mode<synchronous>, transform_indices = @transform_0, window_bounds = array<i64: 2, 1>}, {pipeline_mode = #tpu.pipeline_mode<synchronous>, transform_indices = @transform_1, window_bounds = array<i64: 2, 1>}, {transform_indices = @transform_2, window_bounds = array<i64: 2, 1024>}, {transform_indices = @transform_3, window_bounds = array<i64: 1, 1>}]} {
    %c0_i32 = arith.constant 0 : i32
    %0 = arith.cmpi eq, %arg0, %c0_i32 : i32
    %1 = arith.extui %0 : i1 to i32
    %c0_i32_0 = arith.constant 0 : i32
    %2 = arith.cmpi ne, %1, %c0_i32_0 : i32
    scf.if %2 {
      %cst = arith.constant 0.000000e+00 : f32
      %11 = vector.broadcast %cst : f32 to vector<2x1024xf32>
      %c0_8 = arith.constant 0 : index
      %c0_9 = arith.constant 0 : index
      %12 = vector.load %arg5[%c0_8, %c0_9] : memref<2x1024xf32, #tpu.memory_space<vmem>>, vector<2x1024xf32>
      tpu.vector_store %arg5[%c0_8, %c0_9], %11 {strides = array<i32>} : memref<2x1024xf32, #tpu.memory_space<vmem>>, vector<2x1024xf32>,
    } else {
    }
    %c0 = arith.constant 0 : index
    %c0_1 = arith.constant 0 : index
    %3 = vector.load %arg3[%c0, %c0_1] : memref<2x1024xf32, #tpu.memory_space<vmem>>, vector<2x1024xf32>
    %c0_2 = arith.constant 0 : index
    %c0_3 = arith.constant 0 : index
    %4 = vector.load %arg5[%c0_2, %c0_3] : memref<2x1024xf32, #tpu.memory_space<vmem>>, vector<2x1024xf32>
    %5 = arith.mulf %3, %3 : vector<2x1024xf32>
    %6 = arith.addf %4, %5 : vector<2x1024xf32>
    %c0_4 = arith.constant 0 : index
    %c0_5 = arith.constant 0 : index
    %7 = vector.load %arg5[%c0_4, %c0_5] : memref<2x1024xf32, #tpu.memory_space<vmem>>, vector<2x1024xf32>
    tpu.vector_store %arg5[%c0_4, %c0_5], %6 {strides = array<i32>} : memref<2x1024xf32, #tpu.memory_space<vmem>>, vector<2x1024xf32>,
    %c0_i32_6 = arith.constant 0 : i32
    %8 = arith.cmpi eq, %arg0, %c0_i32_6 : i32
    %9 = arith.extui %8 : i1 to i32
    %c0_i32_7 = arith.constant 0 : i32
    %10 = arith.cmpi ne, %9, %c0_i32_7 : i32
    scf.if %10 {
      %c0_8 = arith.constant 0 : index
      %c0_9 = arith.constant 0 : index
      %11 = vector.load %arg1[%c0_8, %c0_9] : memref<2x1xf32, #tpu.memory_space<vmem>>, vector<2x1xf32>
      %c0_10 = arith.constant 0 : index
      %c0_11 = arith.constant 0 : index
      %12 = vector.load %arg2[%c0_10, %c0_11] : memref<2x1xf32, #tpu.memory_space<vmem>>, vector<2x1xf32>
      %cst = arith.constant 0.000000e+00 : f32
      %13 = vector.broadcast %cst : f32 to vector<2x1xf32>
      %14 = arith.subf %13, %11 : vector<2x1xf32>
      %cst_12 = arith.constant 0.000000e+00 : f32
      %15 = vector.broadcast %cst_12 : f32 to vector<2x1xf32>
      %16 = arith.maximumf %14, %15 : vector<2x1xf32>
      %17 = math.absf %14 : vector<2x1xf32>
      %cst_13 = arith.constant 0.000000e+00 : f32
      %18 = vector.broadcast %cst_13 : f32 to vector<2x1xf32>
      %19 = arith.subf %18, %17 : vector<2x1xf32>
      %20 = math.exp %19 : vector<2x1xf32>
      %21 = math.log1p %20 : vector<2x1xf32>
      %22 = arith.addf %16, %21 : vector<2x1xf32>
      %23 = vector.shape_cast %22 : vector<2x1xf32> to vector<1x2x1xf32>
      %cst_14 = arith.constant dense<0.000000e+00> : vector<1xf32>
      %24 = vector.multi_reduction <add>, %23, %cst_14 [1, 2] : vector<1x2x1xf32> to vector<1xf32>
      %25 = vector.shape_cast %24 : vector<1xf32> to vector<1x1x1xf32>
      %26 = vector.extract %25[0, 0, 0] : f32 from vector<1x1x1xf32>
      %cst_15 = arith.constant 2.000000e+00 : f32
      %27 = arith.divf %26, %cst_15 : f32
      %cst_16 = arith.constant 0.000000e+00 : f32
      %28 = vector.broadcast %cst_16 : f32 to vector<2x1xf32>
      %29 = arith.maximumf %12, %28 : vector<2x1xf32>
      %30 = math.absf %12 : vector<2x1xf32>
      %cst_17 = arith.constant 0.000000e+00 : f32
      %31 = vector.broadcast %cst_17 : f32 to vector<2x1xf32>
      %32 = arith.subf %31, %30 : vector<2x1xf32>
      %33 = math.exp %32 : vector<2x1xf32>
      %34 = math.log1p %33 : vector<2x1xf32>
      %35 = arith.addf %29, %34 : vector<2x1xf32>
      %36 = vector.shape_cast %35 : vector<2x1xf32> to vector<1x2x1xf32>
      %cst_18 = arith.constant dense<0.000000e+00> : vector<1xf32>
      %37 = vector.multi_reduction <add>, %36, %cst_18 [1, 2] : vector<1x2x1xf32> to vector<1xf32>
      %38 = vector.shape_cast %37 : vector<1xf32> to vector<1x1x1xf32>
      %39 = vector.extract %38[0, 0, 0] : f32 from vector<1x1x1xf32>
      %cst_19 = arith.constant 2.000000e+00 : f32
      %40 = arith.divf %39, %cst_19 : f32
      %41 = arith.addf %27, %40 : f32
      %c0_20 = arith.constant 0 : index
      %c0_21 = arith.constant 0 : index
      %42 = vector.load %arg5[%c0_20, %c0_21] : memref<2x1024xf32, #tpu.memory_space<vmem>>, vector<2x1024xf32>
      %43 = vector.shape_cast %42 : vector<2x1024xf32> to vector<1x2x1024xf32>
      %cst_22 = arith.constant dense<0.000000e+00> : vector<1xf32>
      %44 = vector.multi_reduction <add>, %43, %cst_22 [1, 2] : vector<1x2x1024xf32> to vector<1xf32>
      %45 = vector.shape_cast %44 : vector<1xf32> to vector<1x1x1xf32>
      %46 = vector.extract %45[0, 0, 0] : f32 from vector<1x1x1xf32>
      %cst_23 = arith.constant 5.000000e+00 : f32
      %47 = arith.mulf %46, %cst_23 : f32
      %48 = arith.addf %41, %47 : f32
      %c0_24 = arith.constant 0 : index
      %c0_25 = arith.constant 0 : index
      %49 = memref.load %arg4[%c0_24, %c0_25] : memref<1x1xf32, #tpu.memory_space<smem>>
      memref.store %48, %arg4[%c0_24, %c0_25] : memref<1x1xf32, #tpu.memory_space<smem>>
    } else {
    }
    return
  }
  func.func @transform_0(%arg0: i32) -> (i32, i32) {
    %c0_i32 = arith.constant 0 : i32
    %c0_i32_0 = arith.constant 0 : i32
    %c0_i32_1 = arith.constant 0 : i32
    return %c0_i32, %c0_i32_0 : i32, i32
  }
  func.func @transform_1(%arg0: i32) -> (i32, i32) {
    %c0_i32 = arith.constant 0 : i32
    %c0_i32_0 = arith.constant 0 : i32
    %c0_i32_1 = arith.constant 0 : i32
    return %c0_i32, %c0_i32_0 : i32, i32
  }
  func.func @transform_2(%arg0: i32) -> (i32, i32) {
    %c0_i32 = arith.constant 0 : i32
    %c0_i32_0 = arith.constant 0 : i32
    return %c0_i32, %arg0 : i32, i32
  }
  func.func @transform_3(%arg0: i32) -> (i32, i32) {
    %c0_i32 = arith.constant 0 : i32
    %c0_i32_0 = arith.constant 0 : i32
    %c0_i32_1 = arith.constant 0 : i32
    return %c0_i32, %c0_i32_0 : i32, i32
  }
}

</mosaic_0001>

<bundles_post_ra>
// kernel: tpu_custom_call.1
= control target key start
LH: loop header
LB: loop body
LE: loop exit
PB: predicated region body
PF: predicated region fallthrough
CT: control target
= control target key end

     0   :  { %8 = vsyncpa [#allocation4], 0  ;;  %s297_s0 = inlined_call_operand.vmem [shape: f32[2,1], index: 0, kind: input, shape index: {}]   ;;  %s298_s1 = inlined_call_operand.vmem [shape: f32[2,1], index: 1, kind: input, shape index: {}]   ;;  %s299_s2 = inlined_call_operand.hbm [shape: f32[2,1024], index: 2, kind: input, shape index: {}]   ;;  %s300_s3 = inlined_call_operand.hbm [shape: f32[1,1], index: 3, kind: output, shape index: {}]  }
   0x1   :  { %9 = vsyncpa [#allocation5], 0  ;;  %s19_s14 = sshll.u32 %s299_s2, 4  ;;  %s250_s15 = smov [#allocation3]   ;;  %s20_s14 = int_to_ptr.hbm [resolvable:$true] %s19_s14 }
   0x2   :  { %s21_s16 = sshll.u32 %s250_s15, 4  ;;  %s22_s16 = int_to_ptr.vmem [resolvable:$true] %s21_s16 }
   0x3   :  { %24 = dma.hbm_to_vmem [thread:$0]  %s20_s14, 256, %s22_s16, [#allocation4]  }
   0x4   :  { %246 = dma.done.wait [#allocation4], 256  }
   0x5   :  { %247 = vsyncadd [#allocation4], 4294967040  ;;  %v48_v0 = vld [vmem:[%s297_s0] sm:$0x3]  ;;  %v35_v1 = vld [vmem:[#allocation3] sm:$0xff]  ;;  %vm144_vm0 = vcmask 1041408  }
   0x6   :  { %v36_v2 = vld [vmem:[#allocation3 + $0x8] sm:$0xff]  ;;  %v50_v3 = vsub.f32 0.0, %v48_v0  ;;  %v39_v4 = vmul.f32 %v35_v1, %v35_v1  ;;  %v282_v6 = vld [vmem:[%s298_s1] sm:$0x3]  ;;  %vm66_vm3 = vcmask 1024   ;;  %v251_v60 = vmov 2.0  }
   0x7   :  { %v40_v5 = vmul.f32 %v36_v2, %v36_v2  ;;  %v87_v7 = vand.u32 2147483647, %v282_v6  ;;  %v86_v55 = vmax.f32 %v282_v6, 0.0  ;;  %s178_s26 = sshll.u32 %s300_s3, 4  ;;  %s252_s30 = smov [#allocation6]   ;;  %s179_s26 = int_to_ptr.hbm [resolvable:$true] %s178_s26 }
   0x8   :  { %v52_v8 = vand.u32 2147483647, %v50_v3  ;;  %125 = vst [vmem:[#allocation1] ss:$4 sm:$0xff] %v39_v4  ;;  %v51_v45 = vmax.f32 %v50_v3, 0.0 }
   0x9   :  { %127 = vst [vmem:[#allocation1 + $0x20] ss:$4 sm:$0xff] %v40_v5  ;;  %v88_v9 = vsub.f32 0.0, %v87_v7 }
   0xa   :  { %v53_v10 = vsub.f32 0.0, %v52_v8 }
   0xb   :  { %v89_v11 = vmul.f32 1.442695, %v88_v9 }
   0xc   :  { %v54_v12 = vmul.f32 1.442695, %v53_v10 }
   0xd   :  { %200 = vpow2.f32 %v89_v11 }
   0xe   :  { %202 = vpow2.f32 %v54_v12 }
   0xf   :  { %v128_v13 = vld.sshfl [vmem:[#allocation1] sm:$0xff pattern:$0x73625140]  ;;  %v129_v14 = vld.sshfl [vmem:[#allocation1 + $0x8] sm:$0xff pattern:$0x73625140] }
  0x10   :  { %v130_v15 = vld.sshfl [vmem:[#allocation1 + $0x10] sm:$0xff pattern:$0x73625140]  ;;  %v131_v16 = vld.sshfl [vmem:[#allocation1 + $0x18] sm:$0xff pattern:$0x73625140] }
  0x11   :  { %v145_v18 = vsel %vm144_vm0, %v128_v13, 0.0  ;;  %v146_v19 = vsel %vm144_vm0, %v129_v14, 0.0  ;;  %v148_v20 = vsel %vm144_vm0, %v130_v15, 0.0  ;;  %v132_v22 = vld.sshfl [vmem:[#allocation1 + $0x20] sm:$0xff pattern:$0x73625140] }
  0x12   :  { %v147_v23 = vadd.f32 %v146_v19, %v145_v18  ;;  %v150_v26 = vsel %vm144_vm0, %v131_v16, 0.0  ;;  %v133_v27 = vld.sshfl [vmem:[#allocation1 + $0x28] sm:$0xff pattern:$0x73625140]  ;;  %v152_v31 = vsel %vm144_vm0, %v132_v22, 0.0 }
  0x13   :  { %v201_v17 = vpop.eup %200  ;;  %v134_v33 = vld.sshfl [vmem:[#allocation1 + $0x30] sm:$0xff pattern:$0x73625140]  ;;  %v154_v36 = vsel %vm144_vm0, %v133_v27, 0.0 }
  0x14   :  { %v203_v21 = vpop.eup %202  ;;  %v149_v28 = vadd.f32 %v148_v20, %v147_v23  ;;  %v91_v29 = vadd.f32 1.0, %v201_v17  ;;  %v94_v30 = vmul.f32 -0.5, %v201_v17  ;;  %v135_v37 = vld.sshfl [vmem:[#allocation1 + $0x38] sm:$0xff pattern:$0x73625140]  ;;  %v156_v40 = vsel %vm144_vm0, %v134_v33, 0.0 }
  0x15   :  { %v56_v24 = vadd.f32 1.0, %v203_v21  ;;  %v59_v25 = vmul.f32 -0.5, %v203_v21  ;;  %v62_v35 = vand.u32 2147483647, %v203_v21  ;;  %v97_v41 = vand.u32 2147483647, %v201_v17 }
  0x16   :  { %v151_v34 = vadd.f32 %v150_v26, %v149_v28  ;;  %v95_v39 = vadd.f32 1.0, %v94_v30  ;;  %v158_v46 = vsel %vm144_vm0, %v135_v37, 0.0 }
  0x17   :  { %204 = vlog2.f32 %v56_v24  ;;  %v60_v32 = vadd.f32 1.0, %v59_v25  ;;  %vm63_vm1 = vcmp.lt.f32.partialorder %v62_v35, 0.0004427343  ;;  %vm98_vm2 = vcmp.lt.f32.partialorder %v97_v41, 0.0004427343 }
  0x18   :  { %206 = vlog2.f32 %v91_v29  ;;  %v153_v38 = vadd.f32 %v152_v31, %v151_v34  ;;  %v96_v50 = vmul.f32 %v201_v17, %v95_v39 }
  0x19   :  { %v61_v42 = vmul.f32 %v203_v21, %v60_v32  ;;  %208 = vrcp.f32 %v251_v60 }
  0x1a   :  { %v155_v43 = vadd.f32 %v154_v36, %v153_v38 }
  0x1c   :  { %v157_v49 = vadd.f32 %v156_v40, %v155_v43 }
  0x1d   :  { %v205_v44 = vpop.eup %204 }
  0x1e   :  { %v207_v47 = vpop.eup %206  ;;  %v58_v48 = vmul.f32 0.6931472, %v205_v44  ;;  %v159_v53 = vadd.f32 %v158_v46, %v157_v49 }
  0x1f   :  { %v93_v51 = vmul.f32 0.6931472, %v207_v47  ;;  %v209_v61 = vpop.eup %208 }
  0x20   :  { %v64_v52 = vsel %vm63_vm1, %v61_v42, %v58_v48  ;;  %160 = vadd.xlane.f32.xlu1 %v159_v53  ;;  %v78_v62 = vmul.f32 2.0, %v209_v61  ;;  %vm82_vm4 = vweird.f32 %v209_v61 }
  0x21   :  { %v65_v54 = vadd.f32 %v64_v52, %v51_v45  ;;  %v99_v56 = vsel %vm98_vm2, %v96_v50, %v93_v51 }
  0x22   :  { %v100_v58 = vadd.f32 %v99_v56, %v86_v55  ;;  %v79_v0 = vsub.f32 1.0, %v78_v62 }
  0x23   :  { %v67_v57 = vsel %vm66_vm3, %v65_v54, 0.0 }
  0x24   :  { %68 = vadd.xlane.f32.xlu0 %v67_v57  ;;  %v101_v59 = vsel %vm66_vm3, %v100_v58, 0.0  ;;  %v80_v5 = vmul.f32 %v209_v61, %v79_v0 }
  0x26   :  { %v81_v9 = vadd.f32 %v209_v61, %v80_v5 }
  0x28   :  { %v83_v16 = vsel %vm82_vm4, %v209_v61, %v81_v9 }
  0x2c   :  { %102 = vadd.xlane.f32.xlu0 %v101_v59 }
  0x93   :  { %v161_v63 = vpop.xlane.xlu1 %160 }
  0x94   :  { %v162_v2 = vrot.slane %v161_v63, 4 }
  0x96   :  { %v163_v7 = vadd.f32 %v162_v2, %v161_v63 }
  0x97   :  { %v69_v1 = vpop.xlane.xlu0 %68 }
  0x98   :  { %v70_v3 = vrot.slane %v69_v1, 4  ;;  %v164_v10 = vrot.slane %v163_v7, 2 }
  0x9a   :  { %v71_v4 = vadd.f32 %v70_v3, %v69_v1  ;;  %v165_v17 = vadd.f32 %v164_v10, %v163_v7 }
  0x9c   :  { %v72_v6 = vrot.slane %v71_v4, 2  ;;  %v166_v20 = vrot.slane %v165_v17, 1 }
  0x9e   :  { %v73_v8 = vadd.f32 %v72_v6, %v71_v4  ;;  %v167_v23 = vadd.f32 %v166_v20, %v165_v17 }
  0x9f   :  { %v103_v11 = vpop.xlane.xlu0 %102 }
  0xa0   :  { %v104_v12 = vrot.slane %v103_v11, 4  ;;  %v74_v13 = vrot.slane %v73_v8, 1 }
  0xa2   :  { %v105_v14 = vadd.f32 %v104_v12, %v103_v11  ;;  %v75_v15 = vadd.f32 %v74_v13, %v73_v8 }
  0xa4   :  { %v106_v18 = vrot.slane %v105_v14, 2  ;;  %189 = vpush %v75_v15 }
  0xa5   :  { %191 = vpush %v83_v16 }
  0xa6   :  { %v107_v19 = vadd.f32 %v106_v18, %v105_v14 }
  0xa8   :  { %v108_v21 = vrot.slane %v107_v19, 1 }
  0xaa   :  { %v109_v22 = vadd.f32 %v108_v21, %v107_v19 }
  0xac   :  { %193 = vpush %v109_v22 }
  0xad   :  { %195 = vpush %v167_v23 }
  0xd5   :  { %s190_s0 = spop %189 }
  0xd6   :  { %s192_s1 = spop %191 }
  0xd7   :  { %s85_s2 = smul.f32 %s192_s1, %s190_s0 }
  0xdd   :  { %s194_s21 = spop %193 }
  0xde   :  { %s119_s22 = smul.f32 %s194_s21, %s192_s1  ;;  %s196_s23 = spop %195 }
  0xdf   :  { %s169_s28 = smul.f32 5.0, %s196_s23 }
  0xe0   :  { %s120_s27 = sadd.f32 %s119_s22, %s85_s2 }
  0xe2   :  { %s170_s29 = sadd.f32 %s169_s28, %s120_s27 }
  0xe4   :  { %172 = sst [smem:[#allocation6]] %s170_s29 }
  0xe5   :  { %181 = dma.smem_to_hbm %s252_s30, 16, %s179_s26, [#allocation5]  }
  0xe6   :  { %248 = dma.done.wait [#allocation5], 16  }
  0xe7   :  { %249 = vsyncadd [#allocation5], 4294967280 }
  0xe8   :  { %186 = sfence }
  0xe9   :  { %187 = vsyncpa [#allocation4], 1 }
  0xea   :  { %188 = vsyncpa [#allocation5], 1 }

</bundles_post_ra>
